<compile_context>
chip_gen: v5e
topology: v5e:2x2
jax: 0.10.0
libtpu: 0.0.40
codegen_flags: <defaults>
</compile_context>

<pallas_src>
import math

import jax
import jax.numpy as jnp
from jax.experimental import pallas as pl
from jax.experimental.pallas import tpu as pltpu


# ------------------------------ Pallas kernel ------------------------------ #

def _film_kernel(params_ref, delta_ref, x_ref, o_ref):
    # params_ref : SMEM (4,) f32 = [w_gamma, w_beta, b_gamma, b_beta]
    # delta_ref  : VMEM (tm, 1) f32  per-(batch,channel) conditioning scalar
    # x_ref/o_ref: VMEM (tm, ts) activation tile in its NATIVE dtype
    d = delta_ref[...]                                    # (tm, 1) f32
    gamma = d * params_ref[0] + params_ref[2]             # (tm, 1)
    beta = d * params_ref[1] + params_ref[3]              # (tm, 1)
    x = x_ref[...].astype(jnp.float32)                    # upcast in vregs only
    # lane-broadcast of the per-row affine across the spatial tile
    o_ref[...] = (x * gamma + beta).astype(o_ref.dtype)


# -------------------------------- wrapper ----------------------------------- #

def _round_up(x, m):
    return ((x + m - 1) // m) * m


def film_forward(X, delta, weight, bias, *, max_tm=256, max_ts=2048):
    """FiLM layer forward.

    X      : (B, C, D, H, W) float32 / bfloat16
    delta  : (B*C, 1)                 (one conditioning scalar per (b, c))
    weight : (2, 1)                   (torch.nn.Linear(1, 2).weight layout)
    bias   : (2,)
    returns: gamma * X + beta with X's shape and dtype.
    """
    B, C = X.shape[0], X.shape[1]
    S = int(math.prod(X.shape[2:]))
    M = B * C
    assert delta.shape[0] == M, (delta.shape, M)

    itemsize = jnp.dtype(X.dtype).itemsize
    sub = max(8, 32 // itemsize)          # sublane granularity: 8 f32, 16 bf16

    # contiguous (free) reshapes: (b,c) fused on sublanes, spatial on lanes.
    # X stays in its native dtype -> no extra XLA cast pass over HBM.
    x2 = X.reshape(M, S)
    d2 = delta.reshape(M, 1).astype(jnp.float32)          # tiny, cast is free

    # Linear(1,2) parameters as 4 SMEM scalars: [w_g, w_b, b_g, b_b]
    # (assumes the torch (out=2, in=1) weight layout)
    params = jnp.concatenate([jnp.asarray(weight, jnp.float32).reshape(-1),
                              jnp.asarray(bias, jnp.float32).reshape(-1)])

    # ---- tile selection: full dim or (sub,128)-multiple blocks; NO padding,
    #      partial edge blocks are masked by the cdiv grid on writeback. ----
    tm = M if M <= max_tm else max_tm                     # max_tm % sub == 0
    ts = S if S <= max_ts else max_ts                     # max_ts % 128 == 0

    # v7x: guarantee >= 2 blocks along a "parallel" axis so both TensorCores
    # (and their DMA engines) stream HBM instead of one sitting idle.
    if pl.cdiv(M, tm) * pl.cdiv(S, ts) == 1:
        if S >= 256:
            ts = _round_up(pl.cdiv(S, 2), 128)
        elif M >= 2 * sub:
            tm = _round_up(pl.cdiv(M, 2), sub)

    grid = (pl.cdiv(M, tm), pl.cdiv(S, ts))               # M outer, S inner

    out = pl.pallas_call(
        _film_kernel,
        out_shape=jax.ShapeDtypeStruct((M, S), X.dtype),
        grid=grid,
        in_specs=[
            pl.BlockSpec(memory_space=pltpu.MemorySpace.SMEM),   # linear params
            pl.BlockSpec((tm, 1), lambda i, j: (i, 0)),          # delta column
            pl.BlockSpec((tm, ts), lambda i, j: (i, j)),         # X tile
        ],
        out_specs=pl.BlockSpec((tm, ts), lambda i, j: (i, j)),
        compiler_params=pltpu.CompilerParams(
            dimension_semantics=("parallel", "parallel")),
        cost_estimate=pl.CostEstimate(
            flops=2 * M * S + 4 * M,
            transcendentals=0,
            bytes_accessed=2 * M * S * itemsize + 4 * M + 16),
    )(params, d2, x2)

    return out.reshape(X.shape)


# ---------------------------------- test ------------------------------------ #

if __name__ == "__main__":
    key = jax.random.PRNGKey(0)
    kx, kd, kw, kb = jax.random.split(key, 4)

    # small FiLM config: B=2, out_nf=8 channels, 8^3 spatial -> S=512 lane-dense
    B, out_nf, D, H, W = 2, 8, 8, 8, 8
    X = jax.random.normal(kx, (B, out_nf, D, H, W), jnp.float32)
    delta = jax.random.normal(kd, (B * out_nf, 1), jnp.float32)

    # torch.nn.Linear(1, 2) default init: U(-1/sqrt(fan_in), 1/sqrt(fan_in)), fan_in=1
    weight = jax.random.uniform(kw, (2, 1), jnp.float32, -1.0, 1.0)
    bias = jax.random.uniform(kb, (2,), jnp.float32, -1.0, 1.0)

    film_fn = jax.jit(film_forward)

    # plain-JAX reference mirroring the PyTorch forward
    gb = delta @ weight.T + bias                           # (B*out_nf, 2)
    gamma_ref = gb[:, 0].reshape(B, out_nf, 1, 1, 1)
    beta_ref = gb[:, 1].reshape(B, out_nf, 1, 1, 1)
    ref = gamma_ref * X + beta_ref

    # f32 path
    out = jax.block_until_ready(film_fn(X, delta, weight, bias))
    assert out.shape == X.shape and out.dtype == X.dtype
    assert bool(jnp.isfinite(out).all())
    assert float(jnp.max(jnp.abs(out - ref))) < 1e-5

    # native-dtype (bf16) path: HBM streams half the bytes, math still f32
    X_bf = X.astype(jnp.bfloat16)
    out_bf = jax.block_until_ready(film_fn(X_bf, delta, weight, bias))
    assert out_bf.dtype == jnp.bfloat16 and out_bf.shape == X.shape
    ref_bf = (gamma_ref * X_bf.astype(jnp.float32) + beta_ref)
    assert float(jnp.max(jnp.abs(out_bf.astype(jnp.float32) - ref_bf))) < 5e-2

    print("KERNEL_OK")
</pallas_src>

<mosaic_0001>
module attributes {stable_mosaic.version = 11 : i64} {
  func.func @_film_kernel(%arg0: i32, %arg1: i32, %arg2: memref<4xf32, #tpu.memory_space<smem>>, %arg3: memref<16x1xf32, #tpu.memory_space<vmem>>, %arg4: memref<16x256xf32, #tpu.memory_space<vmem>>, %arg5: memref<16x256xf32, #tpu.memory_space<vmem>>) attributes {dimension_semantics = [#tpu.dimension_semantics<parallel>, #tpu.dimension_semantics<parallel>], iteration_bounds = array<i64: 1, 2>, scalar_prefetch = 0 : i64, scratch_operands = 0 : i64, tpu.core_type = #tpu.core_type<tc>, window_params = [{transform_indices = @transform_0, window_bounds = array<i64: 4>}, {transform_indices = @transform_1, window_bounds = array<i64: 16, 1>}, {transform_indices = @transform_2, window_bounds = array<i64: 16, 256>}, {transform_indices = @transform_3, window_bounds = array<i64: 16, 256>}]} {
    %c0 = arith.constant 0 : index
    %c0_0 = arith.constant 0 : index
    %0 = vector.load %arg3[%c0, %c0_0] : memref<16x1xf32, #tpu.memory_space<vmem>>, vector<16x1xf32>
    %c0_1 = arith.constant 0 : index
    %1 = memref.load %arg2[%c0_1] : memref<4xf32, #tpu.memory_space<smem>>
    %2 = vector.broadcast %1 : f32 to vector<16x1xf32>
    %3 = arith.mulf %0, %2 : vector<16x1xf32>
    %c2 = arith.constant 2 : index
    %4 = memref.load %arg2[%c2] : memref<4xf32, #tpu.memory_space<smem>>
    %5 = vector.broadcast %4 : f32 to vector<16x1xf32>
    %6 = arith.addf %3, %5 : vector<16x1xf32>
    %c1 = arith.constant 1 : index
    %7 = memref.load %arg2[%c1] : memref<4xf32, #tpu.memory_space<smem>>
    %8 = vector.broadcast %7 : f32 to vector<16x1xf32>
    %9 = arith.mulf %0, %8 : vector<16x1xf32>
    %c3 = arith.constant 3 : index
    %10 = memref.load %arg2[%c3] : memref<4xf32, #tpu.memory_space<smem>>
    %11 = vector.broadcast %10 : f32 to vector<16x1xf32>
    %12 = arith.addf %9, %11 : vector<16x1xf32>
    %c0_2 = arith.constant 0 : index
    %c0_3 = arith.constant 0 : index
    %13 = vector.load %arg4[%c0_2, %c0_3] : memref<16x256xf32, #tpu.memory_space<vmem>>, vector<16x256xf32>
    %14 = vector.broadcast %6 : vector<16x1xf32> to vector<16x256xf32>
    %15 = arith.mulf %13, %14 : vector<16x256xf32>
    %16 = vector.broadcast %12 : vector<16x1xf32> to vector<16x256xf32>
    %17 = arith.addf %15, %16 : vector<16x256xf32>
    %c0_4 = arith.constant 0 : index
    %c0_5 = arith.constant 0 : index
    %18 = vector.load %arg5[%c0_4, %c0_5] : memref<16x256xf32, #tpu.memory_space<vmem>>, vector<16x256xf32>
    tpu.vector_store %arg5[%c0_4, %c0_5], %17 {strides = array<i32>} : memref<16x256xf32, #tpu.memory_space<vmem>>, vector<16x256xf32>,
    return
  }
  func.func @transform_0(%arg0: i32, %arg1: i32) -> i32 {
    %c0_i32 = arith.constant 0 : i32
    %c0_i32_0 = arith.constant 0 : i32
    return %c0_i32 : i32
  }
  func.func @transform_1(%arg0: i32, %arg1: i32) -> (i32, i32) {
    %c0_i32 = arith.constant 0 : i32
    %c0_i32_0 = arith.constant 0 : i32
    return %arg0, %c0_i32 : i32, i32
  }
  func.func @transform_2(%arg0: i32, %arg1: i32) -> (i32, i32) {
    %c0_i32 = arith.constant 0 : i32
    return %arg0, %arg1 : i32, i32
  }
  func.func @transform_3(%arg0: i32, %arg1: i32) -> (i32, i32) {
    %c0_i32 = arith.constant 0 : i32
    return %arg0, %arg1 : i32, i32
  }
}

</mosaic_0001>

<bundles_post_ra>
// kernel: film_forward.1
= control target key start
LH: loop header
LB: loop body
LE: loop exit
PB: predicated region body
PF: predicated region fallthrough
CT: control target
= control target key end

     0   :  { %8 = vsyncpa [#allocation3], 0  ;;  %s596_s12 = smov 0   ;;  %s598_s13 = smov 0   ;;  %s711_s0 = inlined_call_operand.vmem [shape: f32[4], index: 0, kind: input, shape index: {}]   ;;  %s712_s1 = inlined_call_operand.vmem [shape: f32[16,1], index: 1, kind: input, shape index: {}]   ;;  %s713_s2 = inlined_call_operand.vmem [shape: f32[16,512], index: 2, kind: input, shape index: {}]   ;;  %s714_s3 = inlined_call_operand.vmem [shape: f32[16,512], index: 3, kind: output, shape index: {}]  }
   0x1   :  { %s600_s14 = smov 0   ;;  %s602_s15 = smov 0  }
   0x2   :  { %s604_s16 = smov 0  }
   0x3 LB: > { %s438_s17 = sadd.s32 4294967295, %s572_s16   ;;  %s23_s18 = sadd.s32 1, %s568_s15  ;;  %s572_s16 = sphi %s604_s16, %s14_s16   ;;  %s568_s15 = sphi %s602_s15, %s722_s15   ;;  %s564_s14 = sphi %s600_s14, %s721_s14   ;;  %s560_s13 = sphi %s598_s13, %s720_s13   ;;  %s556_s12 = sphi %s596_s12, %s719_s12  }
   0x4   : > { %p24_p0 = scmp.ge.s32.totalorder %s23_s18, 2  ;;  %s82_s19 = sadd.s32 1, %s560_s13 }
   0x5   : > { %p89_p1 = scmp.ne.s32.totalorder %s560_s13, %s556_s12  ;;  %p90_p2 = scmp.eq.s32.totalorder %s572_s16, 0 }
   0x6   : > { %s724_s18 = smov (%p24_p0, %s23_s18), 0  ;;  %p121_p4 = scmp.eq.s32.totalorder %s438_s17, 1 }
   0x7   : > { %p629_p3 = por %p90_p2, %p89_p1  ;;  %s78_s21 = ssub.s32 %s568_s15, %s724_s18 }
   0x8   : > { %p440_p5 = scmp.ge.s32.totalorder %s572_s16, 1  ;;  %p80_p6 = scmp.eq.s32.totalorder %s78_s21, 0 }
   0x9   : > { %p636_p7 = por %p121_p4, %p89_p1  ;;  %p134_p8 = scmp.lt.s32.totalorder %s572_s16, 3 }
   0xa   : > { %s642_s23 = scalar_select %p80_p6, %s560_s13, %s82_s19  }
   0xb   : > { %p644_p9 = pnand %p440_p5, %p134_p8  ;;  %p648_p10 = scmp.eq.s32.totalorder %s438_s17, 0 }
   0xc   : > { %s146_s28 = sshll.u32 %s711_s0, 4  ;;  %s574_s29 = smov [#allocation2]   ;;  %s147_s28 = int_to_ptr.vmem [resolvable:$true] %s146_s28 }
   0xd   : > { %p465_p11 = pneg %p644_p9  ;;  %p443_p13 = scmp.ge.s32.totalorder %s572_s16, 2 }
   0xf   : > { %p466_p12 = pnand %p648_p10, %p465_p11  ;;  %162 = sbr.rel (%p443_p13) target bundleno = 28 (0x1c), region = 24 }
  0x11   : > { %468 = dma.vmem_to_smem (!%p466_p12), %s147_s28, 16, %s574_s29, [#allocation3]  }
  0x14   : > { %165 = sbr.rel (!%p629_p3) target bundleno = 28 (0x1c), region = 28  ;;  %s167_s30 = sand.u32 (%p629_p3), 1, %s560_s13  }
  0x15   : > { %s459_s4 = sshll.u32 (%p629_p3), %s568_s15, 4  ;;  %s444_s5 = sshll.u32 (%p629_p3), %s167_s30, 5 }
  0x16   : > { %s175_s8 = scalar_lea.vmem (%p629_p3), %s713_s2, %s459_s4  ;;  %s169_s9 = scalar_lea.vmem (%p629_p3), [#allocation4], %s444_s5 }
  0x17   : > { %v188_v0 = vld [vmem:[%s175_s8] sm:$0xff] (%p629_p3)  ;;  %v190_v1 = vld [vmem:[%s175_s8 + $0x8] sm:$0xff] (%p629_p3) }
  0x18   : > { %v192_v2 = vld [vmem:[%s175_s8 + $0x20] sm:$0xff] (%p629_p3)  ;;  %189 = vst [vmem:[%s169_s9] sm:$0xff] (%p629_p3), %v188_v0  ;;  %v194_v3 = vld [vmem:[%s175_s8 + $0x28] sm:$0xff] (%p629_p3) }
  0x19   : > { %191 = vst [vmem:[%s169_s9 + $0x8] sm:$0xff] %v190_v1 }
  0x1a   : > { %193 = vst [vmem:[%s169_s9 + $0x10] sm:$0xff] %v192_v2 }
  0x1b   : > { %195 = vst [vmem:[%s169_s9 + $0x18] sm:$0xff] %v194_v3 }
  0x1c PF: > { %204 = sbr.rel (%p644_p9) target bundleno = 188 (0xbc), region = 51 }
  0x21   : > { %551 = dma.done.wait (%p648_p10), [#allocation3], 16  }
  0x22   : > { %553 = vsyncadd (%p648_p10), [#allocation3], 4294967280  ;;  %s212_s10 = sand.u32 1, %s556_s12  }
  0x23   : > { %s674_s11 = sshll.u32 %s212_s10, 5 }
  0x24   : > { %s677_s17 = scalar_lea.vmem [#allocation4], %s674_s11 }
  0x25   : > { %218 = sfence }
  0x26   : > { %s452_s19 = sld [smem:[#allocation2 + $0x1]]  ;;  %v575_v4 = vmov 0   ;;  %v250_v5 = vld [vmem:[%s712_s1] sm:$0xff]  ;;  %v251_v9 = vld [vmem:[%s712_s1 + $0x8] sm:$0xff]  ;;  %s239_s28 = scalar_lea.vmem [#allocation5], %s674_s11  ;;  %v270_v27 = vld [vmem:[%s677_s17 + $0x10] sm:$0xff] }
  0x27   : > { %514 = vset.pattern.permute.xlu1 %v575_v4  ;;  %513 = vset.pattern.permute.xlu0 %v575_v4  ;;  %s453_s20 = sld [smem:[#allocation2 + $0x3]]  ;;  %v268_v19 = vld [vmem:[%s677_s17] sm:$0xff]  ;;  %v269_v20 = vld [vmem:[%s677_s17 + $0x8] sm:$0xff]  ;;  %v271_v28 = vld [vmem:[%s677_s17 + $0x18] sm:$0xff]  ;;  %s460_s29 = sshll.u32 (%p636_p7), %s564_s14, 4 }
  0x28   : > { %s252_s21 = sld [smem:[#allocation2]]  ;;  %s316_s5 = scalar_lea.vmem (%p636_p7), %s714_s3, %s460_s29 }
  0x29   : > { %s451_s24 = sld [smem:[#allocation2 + $0x2]] }
  0x2c   : > { %v261_v6 = vstv %s452_s19 }
  0x2d   : > { %v262_v7 = vmul.f32 %v261_v6, %v250_v5  ;;  %v265_v8 = vstv %s453_s20  ;;  %v263_v14 = vmul.f32 %v261_v6, %v251_v9 }
  0x2e   : > { %v253_v10 = vstv %s252_s21 }
  0x2f   : > { %v266_v11 = vadd.f32 %v265_v8, %v262_v7  ;;  %v254_v12 = vmul.f32 %v253_v10, %v250_v5  ;;  %v257_v13 = vstv %s451_s24  ;;  %v255_v16 = vmul.f32 %v253_v10, %v251_v9 }
  0x30   : > { %v267_v17 = vadd.f32 %v265_v8, %v263_v14 }
  0x31   : > { %288 = vperm.xlu1 %514, %v266_v11   ;;  %v258_v15 = vadd.f32 %v257_v13, %v254_v12  ;;  %v259_v18 = vadd.f32 %v257_v13, %v255_v16 }
  0x33   : > { %274 = vperm.xlu0 %513, %v258_v15  }
  0x39   : > { %293 = vperm.xlu1 %514, %v267_v17  }
  0x3b   : > { %279 = vperm.xlu0 %513, %v259_v18  }
  0xa3   : > { %v289_v21 = vpop.permute.xlu1 %288 }
  0xa5   : > { %v275_v22 = vpop.permute.xlu0 %274 }
  0xa6   : > { %v282_v23 = vmul.f32 %v275_v22, %v268_v19  ;;  %v283_v24 = vmul.f32 %v275_v22, %v269_v20 }
  0xa8   : > { %v296_v25 = vadd.f32 %v289_v21, %v282_v23  ;;  %v297_v26 = vadd.f32 %v289_v21, %v283_v24 }
  0xaa   : > { %300 = vst [vmem:[%s239_s28] sm:$0xff] %v296_v25 }
  0xab   : > { %301 = vst [vmem:[%s239_s28 + $0x8] sm:$0xff] %v297_v26  ;;  %v294_v32 = vpop.permute.xlu1 %293 }
  0xad   : > { %v280_v29 = vpop.permute.xlu0 %279 }
  0xae   : > { %v284_v30 = vmul.f32 %v280_v29, %v270_v27  ;;  %v285_v31 = vmul.f32 %v280_v29, %v271_v28 }
  0xaf   : > { %310 = sbr.rel (!%p636_p7) target bundleno = 188 (0xbc), region = 63 }
  0xb0   : > { %v298_v33 = vadd.f32 %v294_v32, %v284_v30  ;;  %v299_v34 = vadd.f32 %v294_v32, %v285_v31 }
  0xb1   : > { %v329_v35 = vld [vmem:[%s239_s28] sm:$0xff] (%p636_p7) }
  0xb2   : > { %302 = vst [vmem:[%s239_s28 + $0x10] sm:$0xff] %v298_v33  ;;  %v331_v36 = vld [vmem:[%s239_s28 + $0x8] sm:$0xff] (%p636_p7) }
  0xb3   : > { %303 = vst [vmem:[%s239_s28 + $0x18] sm:$0xff] %v299_v34 }
  0xb4   : > { %330 = vst [vmem:[%s316_s5] sm:$0xff] %v329_v35 }
  0xb5   : > { %332 = vst [vmem:[%s316_s5 + $0x8] sm:$0xff] %v331_v36 }
  0xb9   : > { %v333_v37 = vld [vmem:[%s239_s28 + $0x10] sm:$0xff] }
  0xba   : > { %v335_v38 = vld [vmem:[%s239_s28 + $0x18] sm:$0xff]  ;;  %334 = vst [vmem:[%s316_s5 + $0x20] sm:$0xff] %v333_v37 }
  0xbb   : > { %336 = vst [vmem:[%s316_s5 + $0x28] sm:$0xff] %v335_v38 }
  0xbc PF: > { %s14_s16 = sadd.s32 1, %s572_s16   ;;  %s719_s12 = smov %s560_s13 }
  0xbd   : > { %p11_p0 = scmp.ge.s32.totalorder %s14_s16, 4   ;;  %s720_s13 = smov %s642_s23 }
  0xbe   : > { %s721_s14 = smov %s568_s15  ;;  %s722_s15 = smov %s724_s18 }
  0xbf   :  { %13 = sbr.rel (!%p11_p0) target bundleno = 3 (0x3), region = 121 }
  0xc4   :  { %352 = vsyncpa [#allocation3], 1 }
  0xc5   :  { %354 = vsyncpa [#allocation3 + $0x1], 1 }

</bundles_post_ra>
